<compile_context>
chip_gen: v5e
topology: v5e:2x2
jax: 0.10.0
libtpu: 0.0.40
codegen_flags: <defaults>
</compile_context>

<pallas_src>
import functools

import jax
import jax.numpy as jnp
from jax.experimental import pallas as pl
from jax.experimental.pallas import tpu as pltpu


def _round_up(x, m):
    return ((x + m - 1) // m) * m


def _cdiv(a, b):
    return -(-a // b)


# (default scoped VMEM MiB, physical VMEM MiB, lane multiple, default block_m)
_GEN_CFG = {
    "v5e": (16, 128, 128, 256),
    "v5p": (16, 128, 128, 512),
    "v6e": (32, 128, 256, 768),
    "v7x": (32, 64, 256, 448),
    "unknown": (16, 64, 128, 256),
}


def _tpu_generation():
    try:
        kind = jax.devices()[0].device_kind.lower()
    except Exception:
        return "unknown"
    if "v7" in kind:
        return "v7x"
    if "v6" in kind:
        return "v6e"
    if "v5" in kind and ("lite" in kind or "5e" in kind):
        return "v5e"
    if "v5" in kind:
        return "v5p"
    return "unknown"


def _vmem_capacity_bytes(gen):
    try:
        return int(pltpu.get_tpu_info().vmem_capacity_bytes)
    except Exception:
        return _GEN_CFG.get(gen, _GEN_CFG["unknown"])[1] << 20


def _spec(shape, index_map, buffered=None):
    if buffered is None:
        return pl.BlockSpec(shape, index_map)
    return pl.BlockSpec(shape, index_map, pipeline_mode=pl.Buffered(buffered))


# ---------------- kernels ----------------------------------------------------


def _mlp_resident_kernel(*refs, num_layers, residual):
    """Whole MLP for one batch tile; hidden stack resident in VMEM."""
    if num_layers > 0:
        x_ref, w_in_ref, b_in_ref, w_h_ref, b_h_ref, w_out_ref, b_out_ref, o_ref = refs
    else:
        x_ref, w_in_ref, b_in_ref, w_out_ref, b_out_ref, o_ref = refs

    # project_in + ReLU (f32 accumulate, f32 epilogue)
    h = jnp.dot(x_ref[...], w_in_ref[...], preferred_element_type=jnp.float32)
    h = jnp.maximum(h + b_in_ref[...], 0.0)

    if num_layers > 0:
        wdt = w_h_ref.dtype

        def layer(l, h):
            y = jnp.dot(h.astype(wdt), w_h_ref[l],
                        preferred_element_type=jnp.float32)
            y = jnp.maximum(y + b_h_ref[l], 0.0)
            return h + y if residual else y

        if num_layers <= 8:          # static unroll for short stacks
            for l in range(num_layers):
                h = layer(l, h)
        else:                        # dynamic index into the resident stack
            h = jax.lax.fori_loop(0, num_layers, layer, h)

    y = jnp.dot(h.astype(w_out_ref.dtype), w_out_ref[...],
                preferred_element_type=jnp.float32)
    o_ref[...] = (y + b_out_ref[...]).astype(o_ref.dtype)


def _mlp_stream_kernel(x_ref, w_in_ref, b_in_ref, w_h_ref, b_h_ref,
                       w_out_ref, b_out_ref, o_ref, h_ref, *, residual):
    """Layer axis on the grid; running activation lives in h_ref (f32 VMEM)."""
    l = pl.program_id(1)

    @pl.when(l == 0)
    def _project_in():
        acc = jnp.dot(x_ref[...], w_in_ref[...],
                      preferred_element_type=jnp.float32)
        h_ref[...] = jnp.maximum(acc + b_in_ref[...], 0.0)

    h = h_ref[...]
    w = w_h_ref[...]                  # (H_p, H_p): leading layer dim is Squeezed
    y = jnp.dot(h.astype(w.dtype), w, preferred_element_type=jnp.float32)
    y = jnp.maximum(y + b_h_ref[...], 0.0)
    h_ref[...] = h + y if residual else y

    @pl.when(l == pl.num_programs(1) - 1)
    def _project_out():
        hh = h_ref[...]
        y = jnp.dot(hh.astype(w_out_ref.dtype), w_out_ref[...],
                    preferred_element_type=jnp.float32)
        o_ref[...] = (y + b_out_ref[...]).astype(o_ref.dtype)


# ---------------- parameter preparation (one-time, reusable) -----------------


def prepare_mlp_params(params, *, compute_dtype=None, lane=None):
    """Pad/stack/cast weights once; reuse the result across forward calls."""
    if lane is None:
        lane = _GEN_CFG.get(_tpu_generation(), _GEN_CFG["unknown"])[2]
    w_in, b_in = params["w_in"], params["b_in"]
    w_out, b_out = params["w_out"], params["b_out"]
    hidden = params["hidden"]
    Din, H = w_in.shape
    Dout = w_out.shape[1]
    L = len(hidden)
    wdt = jnp.dtype(compute_dtype) if compute_dtype is not None else w_in.dtype

    Din_p = _round_up(Din, lane)
    H_p = _round_up(H, lane)
    Dout_p = _round_up(Dout, lane)

    w_in_p = jnp.pad(w_in, ((0, Din_p - Din), (0, H_p - H))).astype(wdt)
    b_in_p = jnp.pad(b_in, (0, H_p - H)).reshape(1, H_p).astype(jnp.float32)
    w_out_p = jnp.pad(w_out, ((0, H_p - H), (0, Dout_p - Dout))).astype(wdt)
    b_out_p = jnp.pad(b_out, (0, Dout_p - Dout)).reshape(1, Dout_p).astype(jnp.float32)

    if L > 0:
        w_h = jnp.stack([w for w, _ in hidden])                      # (L, H, H)
        b_h = jnp.stack([b for _, b in hidden])                      # (L, H)
        w_h_p = jnp.pad(w_h, ((0, 0), (0, H_p - H), (0, H_p - H))).astype(wdt)
        b_h_p = jnp.pad(b_h, ((0, 0), (0, H_p - H))).reshape(L, 1, H_p).astype(jnp.float32)
    else:
        w_h_p, b_h_p = None, None

    return {
        "_prepared": True, "lane": lane, "dims": (Din, H, Dout, L),
        "w_in": w_in_p, "b_in": b_in_p, "w_h": w_h_p, "b_h": b_h_p,
        "w_out": w_out_p, "b_out": b_out_p,
    }


# ---------------- wrapper -----------------------------------------------------


def _vmem_estimate(tm, Din_p, H_p, Dout_p, w_item, out_item,
                   resident, hidden_bytes, xo_buf):
    fixed = w_item * (Din_p * H_p + H_p * Dout_p) + 4 * (H_p + Dout_p)  # Buffered(1)
    if resident:
        fixed += hidden_bytes
        streamed = 0
    else:
        streamed = 2 * (w_item * H_p * H_p + 4 * H_p)                   # double-buffered
    xo = xo_buf * (w_item * tm * Din_p + out_item * tm * Dout_p)
    act = 4 * tm * H_p                                                   # f32 activation
    work = 2 * 4 * tm * max(H_p, Dout_p)                                 # headroom
    return fixed + streamed + xo + act + work


def mlp_forward(params, x, *, residual_connection=True, block_m=None,
                force_stream=False):
    """x: [B, input_dim] -> [B, output_dim]; whole MLP in one pallas_call."""
    if not (isinstance(params, dict) and params.get("_prepared")):
        params = prepare_mlp_params(params)
    p = params
    Din, H, Dout, L = p["dims"]
    B, xdin = x.shape
    assert xdin == Din

    gen = _tpu_generation()
    default_vmem_mib, _, _, gen_block_m = _GEN_CFG.get(gen, _GEN_CFG["unknown"])
    cap = _vmem_capacity_bytes(gen)
    if block_m is None:
        block_m = gen_block_m

    w_in_p, b_in_p = p["w_in"], p["b_in"]
    w_out_p, b_out_p = p["w_out"], p["b_out"]
    w_h_p, b_h_p = p["w_h"], p["b_h"]
    Din_p, H_p = w_in_p.shape
    Dout_p = w_out_p.shape[1]
    wdt = w_in_p.dtype
    out_dtype = x.dtype
    w_item = jnp.dtype(wdt).itemsize
    out_item = jnp.dtype(out_dtype).itemsize

    # ---- batch tiling: balance tiles, keep >=2 tiles on v7x for large batches ----
    n_tiles = max(1, _cdiv(B, block_m))
    if gen == "v7x" and n_tiles == 1 and B >= 512:
        n_tiles = 2
    tm = _round_up(_cdiv(B, n_tiles), 8)

    # ---- mode selection + VMEM fitting ----
    hidden_bytes = L * (H_p * H_p * w_item + 4 * H_p) if L > 0 else 0
    resident = (L == 0) or ((not force_stream) and hidden_bytes <= 0.4 * cap)
    xo_buf = 2
    budget = int(0.85 * cap)
    while _vmem_estimate(tm, Din_p, H_p, Dout_p, w_item, out_item,
                         resident, hidden_bytes, xo_buf) > budget:
        if resident and L > 0:
            resident = False                       # stream the hidden stack
        elif xo_buf == 2:
            xo_buf = 1                             # single-buffer x / out tiles
        elif tm > 8:
            tm = max(8, _round_up(tm // 2, 8))     # shrink batch tile
        else:
            break                                  # see TODO(synk) K/N-tiling above
    n_tiles = _cdiv(B, tm)
    tm = _round_up(_cdiv(B, n_tiles), 8)
    Bp = n_tiles * tm

    x_p = jnp.pad(x, ((0, Bp - B), (0, Din_p - Din))).astype(wdt)
    xbuf = 1 if xo_buf == 1 else None

    # ---- specs / grid ----
    if resident:
        grid = (n_tiles,)
        in_specs = [
            _spec((tm, Din_p), lambda i: (i, 0), xbuf),
            _spec((Din_p, H_p), lambda i: (0, 0), 1),
            _spec((1, H_p), lambda i: (0, 0), 1),
        ]
        operands = [x_p, w_in_p, b_in_p]
        if L > 0:
            in_specs += [
                _spec((L, H_p, H_p), lambda i: (0, 0, 0), 1),   # resident hidden stack
                _spec((L, 1, H_p), lambda i: (0, 0, 0), 1),
            ]
            operands += [w_h_p, b_h_p]
        in_specs += [
            _spec((H_p, Dout_p), lambda i: (0, 0), 1),
            _spec((1, Dout_p), lambda i: (0, 0), 1),
        ]
        operands += [w_out_p, b_out_p]
        out_spec = _spec((tm, Dout_p), lambda i: (i, 0), xbuf)
        scratch = []
        dims = ("parallel",)
        kernel = functools.partial(_mlp_resident_kernel, num_layers=L,
                                   residual=residual_connection)
    else:
        grid = (n_tiles, L)
        in_specs = [
            _spec((tm, Din_p), lambda i, l: (i, 0), xbuf),
            _spec((Din_p, H_p), lambda i, l: (0, 0), 1),
            _spec((1, H_p), lambda i, l: (0, 0), 1),
            _spec((pl.Squeezed(), H_p, H_p), lambda i, l: (l, 0, 0)),   # streamed
            _spec((pl.Squeezed(), 1, H_p), lambda i, l: (l, 0, 0)),     # streamed
            _spec((H_p, Dout_p), lambda i, l: (0, 0), 1),
            _spec((1, Dout_p), lambda i, l: (0, 0), 1),
        ]
        operands = [x_p, w_in_p, b_in_p, w_h_p, b_h_p, w_out_p, b_out_p]
        out_spec = _spec((tm, Dout_p), lambda i, l: (i, 0), xbuf)
        scratch = [pltpu.VMEM((tm, H_p), jnp.float32)]
        dims = ("parallel", "arbitrary")
        kernel = functools.partial(_mlp_stream_kernel,
                                   residual=residual_connection)

    # ---- honest cost estimate ----
    flops = 2 * Bp * (Din_p * H_p + L * H_p * H_p + H_p * Dout_p)
    hidden_nbytes = (w_h_p.nbytes + b_h_p.nbytes) if L > 0 else 0
    bytes_accessed = (
        x_p.nbytes + w_in_p.nbytes + b_in_p.nbytes + w_out_p.nbytes + b_out_p.nbytes
        + (1 if resident else n_tiles) * hidden_nbytes
        + Bp * Dout_p * out_item)
    cost = pl.CostEstimate(flops=int(flops), transcendentals=0,
                           bytes_accessed=int(bytes_accessed))

    e_final = _vmem_estimate(tm, Din_p, H_p, Dout_p, w_item, out_item,
                             resident, hidden_bytes, xo_buf)
    vmem_limit = int(min(0.95 * cap,
                         max(float(default_vmem_mib << 20), e_final * 1.5)))
    compiler_params = pltpu.CompilerParams(dimension_semantics=dims,
                                           vmem_limit_bytes=vmem_limit)

    out_p = pl.pallas_call(
        kernel,
        out_shape=jax.ShapeDtypeStruct((Bp, Dout_p), out_dtype),
        grid_spec=pltpu.PrefetchScalarGridSpec(
            num_scalar_prefetch=0,
            grid=grid,
            in_specs=in_specs,
            out_specs=out_spec,
            scratch_shapes=tuple(scratch)),
        compiler_params=compiler_params,
        cost_estimate=cost,
    )(*operands)

    return out_p[:B, :Dout]


# ---------------- parameter init (deterministic, mirrors the module) ---------


def _xavier_uniform(key, fan_in, fan_out, dtype=jnp.float32):
    bound = jnp.sqrt(6.0 / (fan_in + fan_out))
    # stored as [in, out] (transposed relative to PyTorch's [out, in])
    return jax.random.uniform(key, (fan_in, fan_out), dtype=dtype,
                              minval=-bound, maxval=bound)


def _bias_init(key, fan_in, fan_out, dtype=jnp.float32):
    bound = 1.0 / jnp.sqrt(fan_in)
    return jax.random.uniform(key, (fan_out,), dtype=dtype,
                              minval=-bound, maxval=bound)


def init_mlp_params(key, input_dim, hidden_size, output_dim, num_layers):
    keys = jax.random.split(key, 2 * (num_layers + 2))
    params = {
        "w_in": _xavier_uniform(keys[0], input_dim, hidden_size),
        "b_in": _bias_init(keys[1], input_dim, hidden_size),
        "hidden": [],
        "w_out": _xavier_uniform(keys[-2], hidden_size, output_dim),
        "b_out": _bias_init(keys[-1], hidden_size, output_dim),
    }
    for l in range(num_layers):
        kw, kb = keys[2 + 2 * l], keys[3 + 2 * l]
        params["hidden"].append(
            (_xavier_uniform(kw, hidden_size, hidden_size),
             _bias_init(kb, hidden_size, hidden_size)))
    return params


# ---------------- reference (pure JAX) ----------------------------------------


def mlp_forward_ref(params, x, *, residual_connection=True):
    h = jnp.maximum(x @ params["w_in"] + params["b_in"], 0.0)
    for w, b in params["hidden"]:
        layer_out = jnp.maximum(h @ w + b, 0.0)
        h = h + layer_out if residual_connection else layer_out
    return h @ params["w_out"] + params["b_out"]


if __name__ == "__main__":
    batch = 2
    input_dim = 16
    hidden_size = 32
    output_dim = 8
    num_layers = 2

    key = jax.random.PRNGKey(0)
    k_params, k_x = jax.random.split(key)
    params = init_mlp_params(k_params, input_dim, hidden_size, output_dim, num_layers)
    x = jax.random.normal(k_x, (batch, input_dim), dtype=jnp.float32)

    y_ref = mlp_forward_ref(params, x, residual_connection=True)

    # 1) default path: resident hidden stack, native (f32) weights
    prep = prepare_mlp_params(params)
    y = jax.block_until_ready(mlp_forward(prep, x, residual_connection=True))
    assert y.shape == (batch, output_dim)
    assert jnp.allclose(y, y_ref, atol=1e-5, rtol=1e-5), "resident path mismatch"

    # 2) streamed-layer path (layer axis on the grid)
    y2 = jax.block_until_ready(
        mlp_forward(prep, x, residual_connection=True, force_stream=True))
    assert jnp.allclose(y2, y_ref, atol=1e-5, rtol=1e-5), "streaming path mismatch"

    # 3) bf16-fed MXU path (f32 accumulation) — looser tolerance expected
    prep_bf16 = prepare_mlp_params(params, compute_dtype=jnp.bfloat16)
    y3 = jax.block_until_ready(mlp_forward(prep_bf16, x, residual_connection=True))
    assert jnp.allclose(y3, y_ref, atol=1e-1, rtol=1e-1), "bf16 path mismatch"

    print("KERNEL_OK")
</pallas_src>

<mosaic_0001>
module attributes {stable_mosaic.version = 11 : i64} {
  func.func @_mlp_resident_kernel(%arg0: i32, %arg1: memref<8x128xf32, #tpu.memory_space<vmem>>, %arg2: memref<128x128xf32, #tpu.memory_space<vmem>>, %arg3: memref<1x128xf32, #tpu.memory_space<vmem>>, %arg4: memref<2x128x128xf32, #tpu.memory_space<vmem>>, %arg5: memref<2x1x128xf32, #tpu.memory_space<vmem>>, %arg6: memref<128x128xf32, #tpu.memory_space<vmem>>, %arg7: memref<1x128xf32, #tpu.memory_space<vmem>>, %arg8: memref<8x128xf32, #tpu.memory_space<vmem>>) attributes {dimension_semantics = [#tpu.dimension_semantics<parallel>], iteration_bounds = array<i64: 1>, scalar_prefetch = 0 : i64, scratch_operands = 0 : i64, tpu.core_type = #tpu.core_type<tc>, window_params = [{transform_indices = @transform_0, window_bounds = array<i64: 8, 128>}, {pipeline_mode = #tpu.pipeline_mode<synchronous>, transform_indices = @transform_1, window_bounds = array<i64: 128, 128>}, {pipeline_mode = #tpu.pipeline_mode<synchronous>, transform_indices = @transform_2, window_bounds = array<i64: 1, 128>}, {pipeline_mode = #tpu.pipeline_mode<synchronous>, transform_indices = @transform_3, window_bounds = array<i64: 2, 128, 128>}, {pipeline_mode = #tpu.pipeline_mode<synchronous>, transform_indices = @transform_4, window_bounds = array<i64: 2, 1, 128>}, {pipeline_mode = #tpu.pipeline_mode<synchronous>, transform_indices = @transform_5, window_bounds = array<i64: 128, 128>}, {pipeline_mode = #tpu.pipeline_mode<synchronous>, transform_indices = @transform_6, window_bounds = array<i64: 1, 128>}, {transform_indices = @transform_7, window_bounds = array<i64: 8, 128>}]} {
    %c0 = arith.constant 0 : index
    %c0_0 = arith.constant 0 : index
    %0 = vector.load %arg1[%c0, %c0_0] : memref<8x128xf32, #tpu.memory_space<vmem>>, vector<8x128xf32>
    %c0_1 = arith.constant 0 : index
    %c0_2 = arith.constant 0 : index
    %1 = vector.load %arg2[%c0_1, %c0_2] : memref<128x128xf32, #tpu.memory_space<vmem>>, vector<128x128xf32>
    %cst = arith.constant dense<0.000000e+00> : vector<8x128xf32>
    %2 = tpu.matmul %0, %1, %cst {dimension_numbers = #tpu.dot_dimension_numbers<[1], [0], [0], [1], [0, 0, 1, 1], [], []>} : vector<8x128xf32>, vector<128x128xf32>, vector<8x128xf32> -> vector<8x128xf32>
    %c0_3 = arith.constant 0 : index
    %c0_4 = arith.constant 0 : index
    %3 = vector.load %arg3[%c0_3, %c0_4] : memref<1x128xf32, #tpu.memory_space<vmem>>, vector<1x128xf32>
    %4 = vector.broadcast %3 : vector<1x128xf32> to vector<8x128xf32>
    %5 = arith.addf %2, %4 : vector<8x128xf32>
    %cst_5 = arith.constant 0.000000e+00 : f32
    %6 = vector.broadcast %cst_5 : f32 to vector<8x128xf32>
    %7 = arith.maximumf %5, %6 : vector<8x128xf32>
    %c0_6 = arith.constant 0 : index
    %c0_7 = arith.constant 0 : index
    %c0_8 = arith.constant 0 : index
    %8 = vector.load %arg4[%c0_6, %c0_7, %c0_8] : memref<2x128x128xf32, #tpu.memory_space<vmem>>, vector<1x128x128xf32>
    %9 = vector.shape_cast %8 : vector<1x128x128xf32> to vector<128x128xf32>
    %cst_9 = arith.constant dense<0.000000e+00> : vector<8x128xf32>
    %10 = tpu.matmul %7, %9, %cst_9 {dimension_numbers = #tpu.dot_dimension_numbers<[1], [0], [0], [1], [0, 0, 1, 1], [], []>} : vector<8x128xf32>, vector<128x128xf32>, vector<8x128xf32> -> vector<8x128xf32>
    %c0_10 = arith.constant 0 : index
    %c0_11 = arith.constant 0 : index
    %c0_12 = arith.constant 0 : index
    %11 = vector.load %arg5[%c0_10, %c0_11, %c0_12] : memref<2x1x128xf32, #tpu.memory_space<vmem>>, vector<1x1x128xf32>
    %12 = vector.shape_cast %11 : vector<1x1x128xf32> to vector<1x128xf32>
    %13 = vector.broadcast %12 : vector<1x128xf32> to vector<8x128xf32>
    %14 = arith.addf %10, %13 : vector<8x128xf32>
    %cst_13 = arith.constant 0.000000e+00 : f32
    %15 = vector.broadcast %cst_13 : f32 to vector<8x128xf32>
    %16 = arith.maximumf %14, %15 : vector<8x128xf32>
    %17 = arith.addf %7, %16 : vector<8x128xf32>
    %c1 = arith.constant 1 : index
    %c0_14 = arith.constant 0 : index
    %c0_15 = arith.constant 0 : index
    %18 = vector.load %arg4[%c1, %c0_14, %c0_15] : memref<2x128x128xf32, #tpu.memory_space<vmem>>, vector<1x128x128xf32>
    %19 = vector.shape_cast %18 : vector<1x128x128xf32> to vector<128x128xf32>
    %cst_16 = arith.constant dense<0.000000e+00> : vector<8x128xf32>
    %20 = tpu.matmul %17, %19, %cst_16 {dimension_numbers = #tpu.dot_dimension_numbers<[1], [0], [0], [1], [0, 0, 1, 1], [], []>} : vector<8x128xf32>, vector<128x128xf32>, vector<8x128xf32> -> vector<8x128xf32>
    %c1_17 = arith.constant 1 : index
    %c0_18 = arith.constant 0 : index
    %c0_19 = arith.constant 0 : index
    %21 = vector.load %arg5[%c1_17, %c0_18, %c0_19] : memref<2x1x128xf32, #tpu.memory_space<vmem>>, vector<1x1x128xf32>
    %22 = vector.shape_cast %21 : vector<1x1x128xf32> to vector<1x128xf32>
    %23 = vector.broadcast %22 : vector<1x128xf32> to vector<8x128xf32>
    %24 = arith.addf %20, %23 : vector<8x128xf32>
    %cst_20 = arith.constant 0.000000e+00 : f32
    %25 = vector.broadcast %cst_20 : f32 to vector<8x128xf32>
    %26 = arith.maximumf %24, %25 : vector<8x128xf32>
    %27 = arith.addf %17, %26 : vector<8x128xf32>
    %c0_21 = arith.constant 0 : index
    %c0_22 = arith.constant 0 : index
    %28 = vector.load %arg6[%c0_21, %c0_22] : memref<128x128xf32, #tpu.memory_space<vmem>>, vector<128x128xf32>
    %cst_23 = arith.constant dense<0.000000e+00> : vector<8x128xf32>
    %29 = tpu.matmul %27, %28, %cst_23 {dimension_numbers = #tpu.dot_dimension_numbers<[1], [0], [0], [1], [0, 0, 1, 1], [], []>} : vector<8x128xf32>, vector<128x128xf32>, vector<8x128xf32> -> vector<8x128xf32>
    %c0_24 = arith.constant 0 : index
    %c0_25 = arith.constant 0 : index
    %30 = vector.load %arg7[%c0_24, %c0_25] : memref<1x128xf32, #tpu.memory_space<vmem>>, vector<1x128xf32>
    %31 = vector.broadcast %30 : vector<1x128xf32> to vector<8x128xf32>
    %32 = arith.addf %29, %31 : vector<8x128xf32>
    %c0_26 = arith.constant 0 : index
    %c0_27 = arith.constant 0 : index
    %33 = vector.load %arg8[%c0_26, %c0_27] : memref<8x128xf32, #tpu.memory_space<vmem>>, vector<8x128xf32>
    tpu.vector_store %arg8[%c0_26, %c0_27], %32 {strides = array<i32>} : memref<8x128xf32, #tpu.memory_space<vmem>>, vector<8x128xf32>,
    return
  }
  func.func @transform_0(%arg0: i32) -> (i32, i32) {
    %c0_i32 = arith.constant 0 : i32
    %c0_i32_0 = arith.constant 0 : i32
    return %arg0, %c0_i32 : i32, i32
  }
  func.func @transform_1(%arg0: i32) -> (i32, i32) {
    %c0_i32 = arith.constant 0 : i32
    %c0_i32_0 = arith.constant 0 : i32
    %c0_i32_1 = arith.constant 0 : i32
    return %c0_i32, %c0_i32_0 : i32, i32
  }
  func.func @transform_2(%arg0: i32) -> (i32, i32) {
    %c0_i32 = arith.constant 0 : i32
    %c0_i32_0 = arith.constant 0 : i32
    %c0_i32_1 = arith.constant 0 : i32
    return %c0_i32, %c0_i32_0 : i32, i32
  }
  func.func @transform_3(%arg0: i32) -> (i32, i32, i32) {
    %c0_i32 = arith.constant 0 : i32
    %c0_i32_0 = arith.constant 0 : i32
    %c0_i32_1 = arith.constant 0 : i32
    %c0_i32_2 = arith.constant 0 : i32
    return %c0_i32, %c0_i32_0, %c0_i32_1 : i32, i32, i32
  }
  func.func @transform_4(%arg0: i32) -> (i32, i32, i32) {
    %c0_i32 = arith.constant 0 : i32
    %c0_i32_0 = arith.constant 0 : i32
    %c0_i32_1 = arith.constant 0 : i32
    %c0_i32_2 = arith.constant 0 : i32
    return %c0_i32, %c0_i32_0, %c0_i32_1 : i32, i32, i32
  }
  func.func @transform_5(%arg0: i32) -> (i32, i32) {
    %c0_i32 = arith.constant 0 : i32
    %c0_i32_0 = arith.constant 0 : i32
    %c0_i32_1 = arith.constant 0 : i32
    return %c0_i32, %c0_i32_0 : i32, i32
  }
  func.func @transform_6(%arg0: i32) -> (i32, i32) {
    %c0_i32 = arith.constant 0 : i32
    %c0_i32_0 = arith.constant 0 : i32
    %c0_i32_1 = arith.constant 0 : i32
    return %c0_i32, %c0_i32_0 : i32, i32
  }
  func.func @transform_7(%arg0: i32) -> (i32, i32) {
    %c0_i32 = arith.constant 0 : i32
    %c0_i32_0 = arith.constant 0 : i32
    return %arg0, %c0_i32 : i32, i32
  }
}

</mosaic_0001>

<bundles_post_ra>
// kernel: tpu_custom_call.1
= control target key start
LH: loop header
LB: loop body
LE: loop exit
PB: predicated region body
PF: predicated region fallthrough
CT: control target
= control target key end

     0   :  { %12 = vsyncpa [#allocation3], 0  ;;  %s490_s0 = inlined_call_operand.hbm [shape: f32[8,128], index: 0, kind: input, shape index: {}]   ;;  %s491_s1 = inlined_call_operand.hbm [shape: f32[128,128], index: 1, kind: input, shape index: {}]   ;;  %s492_s2 = inlined_call_operand.vmem [shape: f32[1,128], index: 2, kind: input, shape index: {}]   ;;  %s493_s3 = inlined_call_operand.hbm [shape: f32[2,128,128], index: 3, kind: input, shape index: {}]   ;;  %s494_s4 = inlined_call_operand.vmem [shape: f32[2,1,128], index: 4, kind: input, shape index: {}]   ;;  %s495_s5 = inlined_call_operand.hbm [shape: f32[128,128], index: 5, kind: input, shape index: {}]   ;;  %s496_s6 = inlined_call_operand.vmem [shape: f32[1,128], index: 6, kind: input, shape index: {}]   ;;  %s497_s7 = inlined_call_operand.hbm [shape: f32[8,128], index: 7, kind: output, shape index: {}]  }
   0x1   :  { %13 = vsyncpa [#allocation6], 0 }
   0x2   :  { %14 = vsyncpa [#allocation9], 0  ;;  %s31_s26 = sshll.u32 %s491_s1, 4  ;;  %s32_s26 = int_to_ptr.hbm [resolvable:$true] %s31_s26 }
   0x3   :  { %15 = vsyncpa [#allocation4], 0  ;;  %s416_s27 = smov [#allocation5]   ;;  %s21_s8 = sshll.u32 %s490_s0, 4  ;;  %s22_s8 = int_to_ptr.hbm [resolvable:$true] %s21_s8 }
   0x4   :  { %s33_s28 = sshll.u32 %s416_s27, 4  ;;  %s417_s9 = smov 128   ;;  %s34_s28 = int_to_ptr.vmem [resolvable:$true] %s33_s28 }
   0x5   :  { %s418_s10 = smov 8   ;;  %s419_s11 = smov [#allocation2]  }
   0x6   :  { %39 = dma.hbm_to_vmem [thread:$0]  %s32_s26, 2048, %s34_s28, [#allocation6], %s417_s9, %s417_s9, %s418_s10  }
   0x7   :  { %s23_s12 = sshll.u32 %s419_s11, 4  ;;  %s46_s15 = sshll.u32 %s493_s3, 4  ;;  %s24_s12 = int_to_ptr.vmem [resolvable:$true] %s23_s12  ;;  %s47_s15 = int_to_ptr.hbm [resolvable:$true] %s46_s15 }
   0x8   :  { %26 = dma.hbm_to_vmem [thread:$0]  %s22_s8, 128, %s24_s12, [#allocation3]  }
   0x9   :  { %s61_s17 = sshll.u32 %s495_s5, 4  ;;  %s420_s18 = smov [#allocation7]   ;;  %s62_s17 = int_to_ptr.hbm [resolvable:$true] %s61_s17 }
   0xa   :  { %s48_s19 = sshll.u32 %s420_s18, 4  ;;  %s421_s0 = smov [#allocation8]   ;;  %s49_s19 = int_to_ptr.vmem [resolvable:$true] %s48_s19 }
   0xb   :  { %54 = dma.hbm_to_vmem [thread:$0]  %s47_s15, 4096, %s49_s19, [#allocation6], %s417_s9, %s417_s9, %s418_s10  }
   0xc   :  { %s63_s20 = sshll.u32 %s421_s0, 4  ;;  %s64_s20 = int_to_ptr.vmem [resolvable:$true] %s63_s20 }
   0xd   :  { %69 = dma.hbm_to_vmem [thread:$0]  %s62_s17, 2048, %s64_s20, [#allocation9], %s417_s9, %s417_s9, %s418_s10  }
   0xe   :  { %408 = dma.done.wait [#allocation3], 128  }
   0xf   :  { %409 = vsyncadd [#allocation3], 4294967168 }
  0x10   :  { %410 = dma.done.wait [#allocation6], 6144  }
  0x11   :  { %411 = vsyncadd [#allocation6], 4294961152 }
  0x12   :  { %412 = dma.done.wait [#allocation9], 2048  }
  0x13   :  { %413 = vsyncadd [#allocation9], 4294965248  ;;  %v104_v0 = vld [vmem:[#allocation5 + $0x78] sm:$0xff]  ;;  %v103_v1 = vld [vmem:[#allocation5 + $0x70] sm:$0xff]  ;;  %s422_s26 = smov [#allocation10]   ;;  %s264_s30 = sshll.u32 %s497_s7, 4  ;;  %s265_s30 = int_to_ptr.hbm [resolvable:$true] %s264_s30 }
  0x14   :  { %109 = vmatpush.msra.mxu0 %v104_v0  ;;  %v102_v2 = vld [vmem:[#allocation5 + $0x68] sm:$0xff]  ;;  %v101_v3 = vld [vmem:[#allocation5 + $0x60] sm:$0xff]  ;;  %v145_v4 = vld [vmem:[#allocation7 + $0x78] sm:$0xff]  ;;  %s262_s27 = sshll.u32 %s422_s26, 4  ;;  %s263_s27 = int_to_ptr.vmem [resolvable:$true] %s262_s27 }
  0x15   :  { %v100_v5 = vld [vmem:[#allocation5 + $0x58] sm:$0xff]  ;;  %150 = vmatpush.msra.mxu1 %v145_v4  ;;  %v144_v6 = vld [vmem:[#allocation7 + $0x70] sm:$0xff]  ;;  %v143_v7 = vld [vmem:[#allocation7 + $0x68] sm:$0xff] }
  0x16   :  { %110 = vmatpush.msra.mxu0 %v103_v1  ;;  %v99_v8 = vld [vmem:[#allocation5 + $0x50] sm:$0xff]  ;;  %v142_v9 = vld [vmem:[#allocation7 + $0x60] sm:$0xff]  ;;  %v98_v10 = vld [vmem:[#allocation5 + $0x48] sm:$0xff] }
  0x17   :  { %151 = vmatpush.msra.mxu1 %v144_v6  ;;  %v141_v11 = vld [vmem:[#allocation7 + $0x58] sm:$0xff]  ;;  %v97_v12 = vld [vmem:[#allocation5 + $0x40] sm:$0xff]  ;;  %v140_v13 = vld [vmem:[#allocation7 + $0x50] sm:$0xff] }
  0x18   :  { %111 = vmatpush.msra.mxu0 %v102_v2  ;;  %v96_v14 = vld [vmem:[#allocation5 + $0x38] sm:$0xff]  ;;  %v139_v15 = vld [vmem:[#allocation7 + $0x48] sm:$0xff]  ;;  %v95_v16 = vld [vmem:[#allocation5 + $0x30] sm:$0xff] }
  0x19   :  { %152 = vmatpush.msra.mxu1 %v143_v7  ;;  %v138_v17 = vld [vmem:[#allocation7 + $0x40] sm:$0xff]  ;;  %v94_v18 = vld [vmem:[#allocation5 + $0x28] sm:$0xff]  ;;  %v137_v19 = vld [vmem:[#allocation7 + $0x38] sm:$0xff] }
  0x1a   :  { %112 = vmatpush.msra.mxu0 %v101_v3  ;;  %v93_v20 = vld [vmem:[#allocation5 + $0x20] sm:$0xff]  ;;  %v136_v21 = vld [vmem:[#allocation7 + $0x30] sm:$0xff]  ;;  %v92_v22 = vld [vmem:[#allocation5 + $0x18] sm:$0xff] }
  0x1b   :  { %153 = vmatpush.msra.mxu1 %v142_v9  ;;  %v135_v23 = vld [vmem:[#allocation7 + $0x28] sm:$0xff]  ;;  %v91_v24 = vld [vmem:[#allocation5 + $0x10] sm:$0xff]  ;;  %v134_v25 = vld [vmem:[#allocation7 + $0x20] sm:$0xff] }
  0x1c   :  { %113 = vmatpush.msra.mxu0 %v100_v5  ;;  %v90_v26 = vld [vmem:[#allocation5 + $0x8] sm:$0xff]  ;;  %v133_v27 = vld [vmem:[#allocation7 + $0x18] sm:$0xff]  ;;  %v89_v28 = vld [vmem:[#allocation5] sm:$0xff] }
  0x1d   :  { %154 = vmatpush.msra.mxu1 %v141_v11  ;;  %v88_v29 = vld [vmem:[#allocation2] sm:$0xff]  ;;  %v132_v30 = vld [vmem:[#allocation7 + $0x10] sm:$0xff]  ;;  %v131_v31 = vld [vmem:[#allocation7 + $0x8] sm:$0xff] }
  0x1e   :  { %114 = vmatpush.msra.mxu0 %v99_v8  ;;  %v130_v32 = vld [vmem:[#allocation7] sm:$0xff]  ;;  %v188_v33 = vld [vmem:[#allocation7 + $0xf8] sm:$0xff]  ;;  %v187_v34 = vld [vmem:[#allocation7 + $0xf0] sm:$0xff] }
  0x1f   :  { %155 = vmatpush.msra.mxu1 %v140_v13  ;;  %194 = vmatpush.msra.mxu2 %v188_v33  ;;  %v186_v35 = vld [vmem:[#allocation7 + $0xe8] sm:$0xff]  ;;  %v185_v36 = vld [vmem:[#allocation7 + $0xe0] sm:$0xff]  ;;  %v184_v37 = vld [vmem:[#allocation7 + $0xd8] sm:$0xff] }
  0x20   :  { %115 = vmatpush.msra.mxu0 %v98_v10  ;;  %v183_v38 = vld [vmem:[#allocation7 + $0xd0] sm:$0xff]  ;;  %v182_v39 = vld [vmem:[#allocation7 + $0xc8] sm:$0xff]  ;;  %v181_v40 = vld [vmem:[#allocation7 + $0xc0] sm:$0xff] }
  0x21   :  { %156 = vmatpush.msra.mxu1 %v139_v15  ;;  %195 = vmatpush.msra.mxu2 %v187_v34  ;;  %v180_v41 = vld [vmem:[#allocation7 + $0xb8] sm:$0xff]  ;;  %v179_v42 = vld [vmem:[#allocation7 + $0xb0] sm:$0xff]  ;;  %v178_v43 = vld [vmem:[#allocation7 + $0xa8] sm:$0xff] }
  0x22   :  { %116 = vmatpush.msra.mxu0 %v97_v12  ;;  %v177_v44 = vld [vmem:[#allocation7 + $0xa0] sm:$0xff]  ;;  %v284_v45 = vld [vmem:[%s492_s2] ss:$0 sm:$0xff]  ;;  %v175_v50 = vld [vmem:[#allocation7 + $0x90] sm:$0xff] }
  0x23   :  { %157 = vmatpush.msra.mxu1 %v138_v17  ;;  %196 = vmatpush.msra.mxu2 %v186_v35  ;;  %v176_v49 = vld [vmem:[#allocation7 + $0x98] sm:$0xff]  ;;  %v174_v51 = vld [vmem:[#allocation7 + $0x88] sm:$0xff]  ;;  %v173_v52 = vld [vmem:[#allocation7 + $0x80] sm:$0xff] }
  0x24   :  { %117 = vmatpush.msra.mxu0 %v96_v14  ;;  %v231_v53 = vld [vmem:[#allocation8 + $0x78] sm:$0xff]  ;;  %v230_v54 = vld [vmem:[#allocation8 + $0x70] sm:$0xff]  ;;  %v229_v55 = vld [vmem:[#allocation8 + $0x68] sm:$0xff] }
  0x25   :  { %158 = vmatpush.msra.mxu1 %v137_v19  ;;  %197 = vmatpush.msra.mxu2 %v185_v36  ;;  %v228_v56 = vld [vmem:[#allocation8 + $0x60] sm:$0xff]  ;;  %v227_v57 = vld [vmem:[#allocation8 + $0x58] sm:$0xff]  ;;  %v226_v58 = vld [vmem:[#allocation8 + $0x50] sm:$0xff] }
  0x26   :  { %118 = vmatpush.msra.mxu0 %v95_v16  ;;  %236 = vmatpush.msra.mxu3 %v231_v53  ;;  %v225_v59 = vld [vmem:[#allocation8 + $0x48] sm:$0xff]  ;;  %v224_v60 = vld [vmem:[#allocation8 + $0x40] sm:$0xff]  ;;  %v223_v61 = vld [vmem:[#allocation8 + $0x38] sm:$0xff] }
  0x27   :  { %159 = vmatpush.msra.mxu1 %v136_v21  ;;  %198 = vmatpush.msra.mxu2 %v184_v37  ;;  %v222_v62 = vld [vmem:[#allocation8 + $0x30] sm:$0xff]  ;;  %v221_v63 = vld [vmem:[#allocation8 + $0x28] sm:$0xff]  ;;  %v220_v0 = vld [vmem:[#allocation8 + $0x20] sm:$0xff] }
  0x28   :  { %119 = vmatpush.msra.mxu0 %v94_v18  ;;  %237 = vmatpush.msra.mxu3 %v230_v54  ;;  %v285_v1 = vld [vmem:[%s494_s4] ss:$0 sm:$0xff]  ;;  %v218_v7 = vld [vmem:[#allocation8 + $0x10] sm:$0xff]  ;;  %v217_v8 = vld [vmem:[#allocation8 + $0x8] sm:$0xff] }
  0x29   :  { %160 = vmatpush.msra.mxu1 %v135_v23  ;;  %199 = vmatpush.msra.mxu2 %v183_v38  ;;  %v219_v6 = vld [vmem:[#allocation8 + $0x18] sm:$0xff]  ;;  %v216_v9 = vld [vmem:[#allocation8] sm:$0xff] }
  0x2a   :  { %120 = vmatpush.msra.mxu0 %v93_v20  ;;  %238 = vmatpush.msra.mxu3 %v229_v55  ;;  %v286_v10 = vld [vmem:[%s494_s4 + $0x1] ss:$0 sm:$0xff]  ;;  %v287_v15 = vld [vmem:[%s496_s6] ss:$0 sm:$0xff] }
  0x2b   :  { %161 = vmatpush.msra.mxu1 %v134_v25  ;;  %200 = vmatpush.msra.mxu2 %v182_v39 }
  0x2c   :  { %121 = vmatpush.msra.mxu0 %v92_v22  ;;  %239 = vmatpush.msra.mxu3 %v228_v56 }
  0x2d   :  { %162 = vmatpush.msra.mxu1 %v133_v27  ;;  %201 = vmatpush.msra.mxu2 %v181_v40 }
  0x2e   :  { %122 = vmatpush.msra.mxu0 %v91_v24  ;;  %240 = vmatpush.msra.mxu3 %v227_v57 }
  0x2f   :  { %163 = vmatpush.msra.mxu1 %v132_v30  ;;  %202 = vmatpush.msra.mxu2 %v180_v41 }
  0x30   :  { %123 = vmatpush.msra.mxu0 %v90_v26  ;;  %241 = vmatpush.msra.mxu3 %v226_v58 }
  0x31   :  { %164 = vmatpush.msra.mxu1 %v131_v31  ;;  %203 = vmatpush.msra.mxu2 %v179_v42 }
  0x32   :  { %124 = vmatpush.msra.mxu0 %v89_v28  ;;  %242 = vmatpush.msra.mxu3 %v225_v59 }
  0x33   :  { %125 = vmatmul.f32.vlgmr.msra.gmra.mxu0 %v88_v29  ;;  %165 = vmatpush.msra.mxu1 %v130_v32 }
  0x34   :  { %204 = vmatpush.msra.mxu2 %v178_v43  ;;  %243 = vmatpush.msra.mxu3 %v224_v60 }
  0x36   :  { %205 = vmatpush.msra.mxu2 %v177_v44  ;;  %244 = vmatpush.msra.mxu3 %v223_v61 }
  0x38   :  { %206 = vmatpush.msra.mxu2 %v176_v49  ;;  %245 = vmatpush.msra.mxu3 %v222_v62 }
  0x3a   :  { %207 = vmatpush.msra.mxu2 %v175_v50  ;;  %246 = vmatpush.msra.mxu3 %v221_v63 }
  0x3c   :  { %208 = vmatpush.msra.mxu2 %v174_v51  ;;  %247 = vmatpush.msra.mxu3 %v220_v0 }
  0x3e   :  { %209 = vmatpush.msra.mxu2 %v173_v52  ;;  %248 = vmatpush.msra.mxu3 %v219_v6 }
  0x40   :  { %249 = vmatpush.msra.mxu3 %v218_v7 }
  0x42   :  { %250 = vmatpush.msra.mxu3 %v217_v8 }
  0x44   :  { %251 = vmatpush.msra.mxu3 %v216_v9 }
  0xb0   :  { %v126_v46 = vpop.f32.mrf.mxu0 }
  0xb1   :  { %v127_v47 = vadd.f32 %v284_v45, %v126_v46 }
  0xb3   :  { %v129_v48 = vmax.f32 %v127_v47, 0.0 }
  0xb5   :  { %166 = vmatmul.f32.vlgmr.msra.gmra.mxu1 %v129_v48 }
 0x132   :  { %v167_v2 = vpop.f32.mrf.mxu1 }
 0x133   :  { %v168_v3 = vadd.f32 %v285_v1, %v167_v2 }
 0x135   :  { %v170_v4 = vmax.f32 %v168_v3, 0.0 }
 0x137   :  { %v171_v5 = vadd.f32 %v170_v4, %v129_v48 }
 0x139   :  { %210 = vmatmul.f32.vlgmr.msra.gmra.mxu2 %v171_v5 }
 0x1bc   :  { %v211_v11 = vpop.f32.mrf.mxu2 }
 0x1bd   :  { %v212_v12 = vadd.f32 %v286_v10, %v211_v11 }
 0x1bf   :  { %v214_v13 = vmax.f32 %v212_v12, 0.0 }
 0x1c1   :  { %v215_v14 = vadd.f32 %v214_v13, %v171_v5 }
 0x1c3   :  { %252 = vmatmul.f32.vlgmr.msra.gmra.mxu3 %v215_v14 }
 0x246   :  { %v253_v16 = vpop.f32.mrf.mxu3 }
 0x247   :  { %v254_v17 = vadd.f32 %v287_v15, %v253_v16 }
 0x249   :  { %256 = vst [vmem:[#allocation10] sm:$0xff] %v254_v17 }
 0x24a   :  { %267 = dma.vmem_to_hbm [thread:$0]  %s263_s27, 128, %s265_s30, [#allocation4]  }
 0x24b   :  { %414 = dma.done.wait [#allocation4], 128  }
 0x24c   :  { %415 = vsyncadd [#allocation4], 4294967168 }
 0x24d   :  { %272 = vsyncpa [#allocation3], 1 }
 0x24e   :  { %273 = vsyncpa [#allocation6], 1 }
 0x24f   :  { %274 = vsyncpa [#allocation9], 1 }
 0x250   :  { %275 = vsyncpa [#allocation4], 1 }

</bundles_post_ra>
